<compile_context>
chip_gen: v5e
topology: v5e:2x2
jax: 0.10.0
libtpu: 0.0.40
codegen_flags: <defaults>
</compile_context>

<pallas_src>
import math

import jax
import jax.numpy as jnp
import numpy as np
from jax.experimental import pallas as pl
from jax.experimental.pallas import tpu as pltpu


# ----------------------------- fused SE kernel --------------------------------

def _se_kernel(x_ref, w1t_ref, w2t_ref, o_ref):
    # One batch tile per grid step: x_ref is (tb, L, C); weights are full (already W^T).
    x = x_ref[...]                                   # (tb, L, C)

    # squeeze: torch.mean(x, dim=1)
    s = jnp.mean(x, axis=1)                          # (tb, C)

    # excite: fc1 (no bias) -> ReLU -> fc2 (no bias) -> sigmoid
    h = jnp.dot(s, w1t_ref[...], preferred_element_type=jnp.float32)   # (tb, C_r)
    h = jnp.maximum(h, 0.0)
    z = jnp.dot(h, w2t_ref[...], preferred_element_type=jnp.float32)   # (tb, C)
    att = jax.nn.sigmoid(z)

    # scale: x * attention.unsqueeze(1)
    o_ref[...] = x * att[:, None, :]


def se_layer_pallas(x, fc1_w, fc2_w, *, batch_tile=None):
    """SELayer.forward(x) with x: (B, L, C), fc1_w: (C//r, C), fc2_w: (C, C//r)."""
    B, L, C = x.shape
    Cr = fc1_w.shape[0]

    tb = B if batch_tile is None else min(batch_tile, B)
    grid = (pl.cdiv(B, tb),)

    # Pre-transpose the (tiny) weights once so the kernel runs NN-form MXU matmuls.
    w1_t = jnp.transpose(fc1_w)                      # (C, C_r)
    w2_t = jnp.transpose(fc2_w)                      # (C_r, C)

    return pl.pallas_call(
        _se_kernel,
        grid=grid,
        in_specs=[
            pl.BlockSpec((tb, L, C), lambda i: (i, 0, 0)),   # x: tiled over batch
            pl.BlockSpec((C, Cr), lambda i: (0, 0)),         # W1^T: full, replicated
            pl.BlockSpec((Cr, C), lambda i: (0, 0)),         # W2^T: full, replicated
        ],
        out_specs=pl.BlockSpec((tb, L, C), lambda i: (i, 0, 0)),
        out_shape=jax.ShapeDtypeStruct((B, L, C), jnp.float32),
        compiler_params=pltpu.CompilerParams(
            dimension_semantics=("parallel",),               # v7x: shard batch across TCs
        ),
    )(x, w1_t, w2_t)


# --------------------------- pure-JAX reference --------------------------------

def se_layer_reference(x, fc1_w, fc2_w):
    s = jnp.mean(x, axis=1)
    h = jax.nn.relu(s @ fc1_w.T)
    att = jax.nn.sigmoid(h @ fc2_w.T)
    return x * att[:, None, :]


# ----------------------------------- main --------------------------------------

if __name__ == "__main__":
    B, L, C = 2, 8, 32          # batch, seq, channel (feature-last, as nn.Linear sees it)
    reduction = 16
    Cr = C // reduction         # = 2

    key = jax.random.PRNGKey(0)
    kx, k1, k2 = jax.random.split(key, 3)

    x = jax.random.normal(kx, (B, L, C), jnp.float32)
    # nn.Linear default init: U(-1/sqrt(fan_in), 1/sqrt(fan_in)), bias=False
    b1 = 1.0 / math.sqrt(C)
    fc1_w = jax.random.uniform(k1, (Cr, C), jnp.float32, -b1, b1)
    b2 = 1.0 / math.sqrt(Cr)
    fc2_w = jax.random.uniform(k2, (C, Cr), jnp.float32, -b2, b2)

    out = se_layer_pallas(x, fc1_w, fc2_w)
    out = jax.block_until_ready(out)

    ref = se_layer_reference(x, fc1_w, fc2_w)
    assert out.shape == (B, L, C)
    assert np.allclose(np.asarray(out), np.asarray(ref), rtol=1e-5, atol=1e-5)

    print("KERNEL_OK")
</pallas_src>

<mosaic_0001>
module attributes {stable_mosaic.version = 11 : i64} {
  func.func @_se_kernel(%arg0: i32, %arg1: memref<2x8x32xf32, #tpu.memory_space<vmem>>, %arg2: memref<32x2xf32, #tpu.memory_space<vmem>>, %arg3: memref<2x32xf32, #tpu.memory_space<vmem>>, %arg4: memref<2x8x32xf32, #tpu.memory_space<vmem>>) attributes {dimension_semantics = [#tpu.dimension_semantics<parallel>], iteration_bounds = array<i64: 1>, scalar_prefetch = 0 : i64, scratch_operands = 0 : i64, tpu.core_type = #tpu.core_type<tc>, window_params = [{transform_indices = @transform_0, window_bounds = array<i64: 2, 8, 32>}, {pipeline_mode = #tpu.pipeline_mode<synchronous>, transform_indices = @transform_1, window_bounds = array<i64: 32, 2>}, {pipeline_mode = #tpu.pipeline_mode<synchronous>, transform_indices = @transform_2, window_bounds = array<i64: 2, 32>}, {transform_indices = @transform_3, window_bounds = array<i64: 2, 8, 32>}]} {
    %c0 = arith.constant 0 : index
    %c0_0 = arith.constant 0 : index
    %c0_1 = arith.constant 0 : index
    %0 = vector.load %arg1[%c0, %c0_0, %c0_1] : memref<2x8x32xf32, #tpu.memory_space<vmem>>, vector<2x8x32xf32>
    %cst = arith.constant dense<0.000000e+00> : vector<2x32xf32>
    %1 = vector.multi_reduction <add>, %0, %cst [1] : vector<2x8x32xf32> to vector<2x32xf32>
    %cst_2 = arith.constant 8.000000e+00 : f32
    %2 = vector.broadcast %cst_2 : f32 to vector<2x32xf32>
    %3 = arith.divf %1, %2 : vector<2x32xf32>
    %c0_3 = arith.constant 0 : index
    %c0_4 = arith.constant 0 : index
    %4 = vector.load %arg2[%c0_3, %c0_4] : memref<32x2xf32, #tpu.memory_space<vmem>>, vector<32x2xf32>
    %cst_5 = arith.constant dense<0.000000e+00> : vector<2x2xf32>
    %5 = tpu.matmul %3, %4, %cst_5 {dimension_numbers = #tpu.dot_dimension_numbers<[1], [0], [0], [1], [0, 0, 1, 1], [], []>} : vector<2x32xf32>, vector<32x2xf32>, vector<2x2xf32> -> vector<2x2xf32>
    %cst_6 = arith.constant 0.000000e+00 : f32
    %6 = vector.broadcast %cst_6 : f32 to vector<2x2xf32>
    %7 = arith.maximumf %5, %6 : vector<2x2xf32>
    %c0_7 = arith.constant 0 : index
    %c0_8 = arith.constant 0 : index
    %8 = vector.load %arg3[%c0_7, %c0_8] : memref<2x32xf32, #tpu.memory_space<vmem>>, vector<2x32xf32>
    %cst_9 = arith.constant dense<0.000000e+00> : vector<2x32xf32>
    %9 = tpu.matmul %7, %8, %cst_9 {dimension_numbers = #tpu.dot_dimension_numbers<[1], [0], [0], [1], [0, 0, 1, 1], [], []>} : vector<2x2xf32>, vector<2x32xf32>, vector<2x32xf32> -> vector<2x32xf32>
    %10 = arith.negf %9 : vector<2x32xf32>
    %11 = math.exp %10 : vector<2x32xf32>
    %cst_10 = arith.constant 1.000000e+00 : f32
    %12 = vector.broadcast %cst_10 : f32 to vector<2x32xf32>
    %13 = arith.addf %12, %11 : vector<2x32xf32>
    %14 = arith.divf %12, %13 : vector<2x32xf32>
    %15 = vector.shape_cast %14 : vector<2x32xf32> to vector<2x1x32xf32>
    %16 = vector.broadcast %15 : vector<2x1x32xf32> to vector<2x8x32xf32>
    %17 = arith.mulf %0, %16 : vector<2x8x32xf32>
    %c0_11 = arith.constant 0 : index
    %c0_12 = arith.constant 0 : index
    %c0_13 = arith.constant 0 : index
    %18 = vector.load %arg4[%c0_11, %c0_12, %c0_13] : memref<2x8x32xf32, #tpu.memory_space<vmem>>, vector<2x8x32xf32>
    tpu.vector_store %arg4[%c0_11, %c0_12, %c0_13], %17 {strides = array<i32>} : memref<2x8x32xf32, #tpu.memory_space<vmem>>, vector<2x8x32xf32>,
    return
  }
  func.func @transform_0(%arg0: i32) -> (i32, i32, i32) {
    %c0_i32 = arith.constant 0 : i32
    %c0_i32_0 = arith.constant 0 : i32
    %c0_i32_1 = arith.constant 0 : i32
    return %arg0, %c0_i32, %c0_i32_0 : i32, i32, i32
  }
  func.func @transform_1(%arg0: i32) -> (i32, i32) {
    %c0_i32 = arith.constant 0 : i32
    %c0_i32_0 = arith.constant 0 : i32
    %c0_i32_1 = arith.constant 0 : i32
    return %c0_i32, %c0_i32_0 : i32, i32
  }
  func.func @transform_2(%arg0: i32) -> (i32, i32) {
    %c0_i32 = arith.constant 0 : i32
    %c0_i32_0 = arith.constant 0 : i32
    %c0_i32_1 = arith.constant 0 : i32
    return %c0_i32, %c0_i32_0 : i32, i32
  }
  func.func @transform_3(%arg0: i32) -> (i32, i32, i32) {
    %c0_i32 = arith.constant 0 : i32
    %c0_i32_0 = arith.constant 0 : i32
    %c0_i32_1 = arith.constant 0 : i32
    return %arg0, %c0_i32, %c0_i32_0 : i32, i32, i32
  }
}

</mosaic_0001>

<bundles_post_ra>
// kernel: tpu_custom_call.1
= control target key start
LH: loop header
LB: loop body
LE: loop exit
PB: predicated region body
PF: predicated region fallthrough
CT: control target
= control target key end

     0   :  { %vm17_vm0 = vcmask 261120   ;;  %v188_v4 = vmov 8.0   ;;  %s249_s0 = inlined_call_operand.vmem [shape: f32[2,8,32], index: 0, kind: input, shape index: {}]   ;;  %s250_s1 = inlined_call_operand.vmem [shape: f32[32,2], index: 1, kind: input, shape index: {}]   ;;  %s251_s2 = inlined_call_operand.vmem [shape: f32[2,32], index: 2, kind: input, shape index: {}]   ;;  %s252_s3 = inlined_call_operand.hbm [shape: f32[2,8,32], index: 3, kind: output, shape index: {}]  }
   0x1   :  { %v44_v0 = vld [vmem:[%s250_s1 + $0x18] sm:$0xff]  ;;  %v43_v1 = vld [vmem:[%s250_s1 + $0x10] sm:$0xff]  ;;  %v221_v2 = vld [vmem:[%s249_s0] sm:$0xff]  ;;  %156 = vrcp.f32 %v188_v4 }
   0x2   :  { %63 = vmatpush.msra.mxu0 %v44_v0  ;;  %v226_v3 = vld [vmem:[%s249_s0 + $0x8] sm:$0xff]  ;;  %v18_v6 = vsel %vm17_vm0, %v221_v2, 0.0 }
   0x3   :  { %v42_v5 = vld [vmem:[%s250_s1 + $0x8] sm:$0xff]  ;;  %v25_v7 = vsel %vm17_vm0, %v226_v3, 0.0 }
   0x4   :  { %8 = vsyncpa [#allocation3], 0  ;;  %64 = vmatpush.msra.mxu0 %v43_v1  ;;  %v19_v8 = vrot.slane %v18_v6, 4  ;;  %v26_v9 = vrot.slane %v25_v7, 4  ;;  %v41_v10 = vld [vmem:[%s250_s1] sm:$0xff]  ;;  %vm47_vm2 = vcmask 1041409  }
   0x5   :  { %v72_v30 = vld [vmem:[%s251_s2] sm:$0x3]  ;;  %vm77_vm3 = vcmask 1041408   ;;  %vm73_vm4 = vcmask 15360   ;;  %s189_s2 = smov [#allocation2]   ;;  %s136_s27 = sshll.u32 %s252_s3, 4  ;;  %s137_s27 = int_to_ptr.hbm [resolvable:$true] %s136_s27 }
   0x6   :  { %65 = vmatpush.msra.mxu0 %v42_v5  ;;  %v20_v11 = vadd.f32 %v19_v8, %v18_v6  ;;  %v27_v12 = vadd.f32 %v26_v9, %v25_v7  ;;  %149 = vmatpush.msk.msra.mxu1 %vm77_vm3, %v72_v30  ;;  %s134_s24 = sshll.u32 %s189_s2, 4  ;;  %s190_s28 = smov 128   ;;  %s135_s24 = int_to_ptr.vmem [resolvable:$true] %s134_s24 }
   0x7   :  { %v157_v13 = vpop.eup %156  ;;  %s191_s29 = smov 8  }
   0x8   :  { %66 = vmatpush.msra.mxu0 %v41_v10  ;;  %v21_v14 = vrot.slane %v20_v11, 2  ;;  %v28_v15 = vrot.slane %v27_v12, 2  ;;  %v33_v16 = vmul.f32 8.0, %v157_v13  ;;  %vm37_vm1 = vweird.f32 %v157_v13 }
   0xa   :  { %v22_v17 = vadd.f32 %v21_v14, %v20_v11  ;;  %v29_v18 = vadd.f32 %v28_v15, %v27_v12  ;;  %v34_v19 = vsub.f32 1.0, %v33_v16 }
   0xc   :  { %v23_v20 = vrot.slane %v22_v17, 1  ;;  %v30_v21 = vrot.slane %v29_v18, 1  ;;  %v35_v22 = vmul.f32 %v157_v13, %v34_v19 }
   0xe   :  { %v24_v23 = vadd.f32 %v23_v20, %v22_v17  ;;  %v31_v24 = vadd.f32 %v30_v21, %v29_v18  ;;  %v36_v25 = vadd.f32 %v157_v13, %v35_v22 }
  0x10   :  { %v38_v26 = vsel %vm37_vm1, %v157_v13, %v36_v25 }
  0x11   :  { %v39_v27 = vmul.f32 %v38_v26, %v24_v23  ;;  %v40_v28 = vmul.f32 %v38_v26, %v31_v24 }
  0x13   :  { %v48_v29 = vsel %vm47_vm2, %v40_v28, %v39_v27 }
  0x14   :  { %148 = vmatmul.msk.f32.vlgmr.msra.gmra.mxu0 %vm17_vm0, %v48_v29 }
  0x91   :  { %v68_v31 = vpop.f32.mrf.mxu0 }
  0x92   :  { %v71_v32 = vmax.f32 %v68_v31, 0.0 }
  0x94   :  { %150 = vmatmul.msk.f32.vlgmr.msra.gmra.mxu1 %vm73_vm4, %v71_v32 }
 0x111   :  { %v98_v33 = vpop.f32.mrf.mxu1 }
 0x112   :  { %v151_v34 = vmul.f32 -1.442695, %v98_v33 }
 0x114   :  { %158 = vpow2.f32 %v151_v34 }
 0x11a   :  { %v159_v35 = vpop.eup %158 }
 0x11b   :  { %v104_v36 = vadd.f32 1.0, %v159_v35 }
 0x11d   :  { %160 = vrcp.f32 %v104_v36  ;;  %v116_v40 = vand.u32 2147483648, %v104_v36  ;;  %v114_v42 = vand.u32 2147483647, %v104_v36  ;;  %vm110_vm6 = vweird.f32 %v104_v36 }
 0x11f   :  { %v117_v44 = vor.u32 1.1754944e-38, %v116_v40  ;;  %vm115_vm8 = vcmp.eq.f32.partialorder %v114_v42, 8.507059e+37 }
 0x123   :  { %v161_v37 = vpop.eup %160 }
 0x124   :  { %v106_v38 = vmul.f32 %v161_v37, %v104_v36  ;;  %vm111_vm5 = vweird.f32 %v161_v37 }
 0x125   :  { %vm112_vm7 = vmor %vm110_vm6, %vm111_vm5 }
 0x126   :  { %v107_v39 = vsub.f32 1.0, %v106_v38 }
 0x128   :  { %v108_v41 = vmul.f32 %v161_v37, %v107_v39 }
 0x12a   :  { %v109_v43 = vadd.f32 %v161_v37, %v108_v41 }
 0x12c   :  { %v113_v45 = vsel %vm112_vm7, %v161_v37, %v109_v43 }
 0x12d   :  { %v118_v46 = vsel %vm115_vm8, %v117_v44, %v113_v45 }
 0x12e   :  { %v121_v47 = vrot.slane %v118_v46, 1  ;;  %v122_v48 = vperm.slane %v118_v46, 0 }
 0x130   :  { %v123_v49 = vperm.slane %v121_v47, 0  ;;  %v126_v50 = vmul.f32 %v122_v48, %v221_v2 }
 0x132   :  { %v127_v51 = vmul.f32 %v123_v49, %v226_v3  ;;  %128 = vst.msk [vmem:[#allocation2] sm:$0xff] %vm17_vm0, %v126_v50 }
 0x134   :  { %129 = vst.msk [vmem:[#allocation2 + $0x8] sm:$0xff] %vm17_vm0, %v127_v51 }
 0x135   :  { %142 = dma.vmem_to_hbm [thread:$0]  %s135_s24, 256, %s137_s27, [#allocation3], %s190_s28, %s190_s28, %s191_s29  }
 0x136   :  { %186 = dma.done.wait [#allocation3], 256  }
 0x137   :  { %187 = vsyncadd [#allocation3], 4294967040 }
 0x138   :  { %147 = vsyncpa [#allocation3], 1 }

</bundles_post_ra>
